<compile_context>
chip_gen: v7x
topology: tpu7x:2x2x1
jax: 0.10.0
libtpu: 0.0.40
codegen_flags: <defaults>
</compile_context>

<pallas_src>
import functools

import jax
import jax.numpy as jnp
from jax.experimental import pallas as pl
from jax.experimental.pallas import tpu as pltpu


def _fused_kernel(x_ref, w_ref, res_ref, gamma_ref, beta_ref, o_ref,
                  *, inv_count, eps):
    """One grid step handles `tile_co` output channels end-to-end.

    x_ref      : (Cin, N*L)       whole input (constant block, DMA'd once)
    w_ref      : (tile_co, Cin)   conv-weight slab
    res_ref    : (tile_co, N*L)   residual slab (f32)
    gamma/beta : (tile_co, 1)
    o_ref      : (tile_co, N*L)
    """
    # ---- 1x1 conv as ONE MXU matmul over the folded (N*H*W) lane axis ----
    y = jnp.dot(w_ref[...], x_ref[...], preferred_element_type=jnp.float32)

    # ---- single-pass per-channel batch statistics (lane reduction) ----
    s = jnp.sum(y, axis=-1, keepdims=True)            # (tile_co, 1)
    sq = jnp.sum(y * y, axis=-1, keepdims=True)       # (tile_co, 1)
    mean = s * inv_count
    var = jnp.maximum(sq * inv_count - mean * mean, 0.0)   # clamp at 0
    inv_std = jax.lax.rsqrt(var + eps)

    scale = gamma_ref[...] * inv_std                   # (tile_co, 1)
    shift = beta_ref[...] - mean * scale

    # ---- normalize + residual add + ReLU ----
    o_ref[...] = jnp.maximum(y * scale + shift + res_ref[...], 0.0
                             ).astype(o_ref.dtype)


def _pad_up(v, m):
    return -(-v // m) * m


def _vmem_estimate(cin, nl, tile_co, mm_itemsize):
    """Estimated VMEM footprint (bytes) of one grid step, incl. double buffers."""
    nl_p = _pad_up(nl, 128)
    cin_p = _pad_up(cin, 8)
    tc_p = _pad_up(tile_co, 8)
    x_b = 2 * cin_p * nl_p * mm_itemsize      # invariant, but 2 pipeline buffers
    w_b = 2 * tc_p * cin_p * mm_itemsize
    res_b = 2 * tc_p * nl_p * 4
    out_b = 2 * tc_p * nl_p * 4
    y_b = tc_p * nl_p * 4                     # f32 conv slab held across the body
    small = 2 * 2 * tc_p * 128 * 4            # gamma + beta (lane padded)
    return x_b + w_b + res_b + out_b + y_b + small


def _pick_cout_tile(cout, cin, nl, mm_itemsize, vmem_budget):
    """Largest multiple-of-8 divisor of cout (<=512) fitting the VMEM budget,
    preferring an even grid length (balanced across v7x's 2 TensorCores)."""
    cands = [d for d in range(8, min(cout, 512) + 1, 8)
             if cout % d == 0
             and _vmem_estimate(cin, nl, d, mm_itemsize) <= vmem_budget]
    if not cands:
        return 8 if cout % 8 == 0 else cout
    even = [d for d in cands if (cout // d) % 2 == 0]
    return max(even) if even else max(cands)


def conv_bn_add_relu(x33, x21, conv_w, gamma, beta, eps=1e-5, tile_co=None,
                     matmul_dtype=jnp.bfloat16):
    """x33, x21: NCHW float32. conv_w: (Cout, Cin, 1, 1). Returns NCHW float32.

    matmul_dtype controls only the MXU operand dtype (x, w); accumulation,
    BN statistics, normalization, residual add and ReLU are all f32.
    """
    N, Cin, H, W = x33.shape
    Cout = conv_w.shape[0]
    L = H * W
    NL = N * L
    mm_itemsize = jnp.dtype(matmul_dtype).itemsize

    # NCHW -> (C, N*L): channels on sublanes, batch folded into the lane axis.
    # Pure reshape for N == 1 (the module's real shape); one wrapper-side
    # transpose otherwise.
    x = jnp.transpose(x33.reshape(N, Cin, L), (1, 0, 2)).reshape(Cin, NL)
    x = x.astype(matmul_dtype)
    res = jnp.transpose(x21.reshape(N, Cout, L), (1, 0, 2)).reshape(Cout, NL)
    res = res.astype(jnp.float32)
    w_mat = conv_w.reshape(Cout, Cin).astype(matmul_dtype)
    g = gamma.reshape(Cout, 1).astype(jnp.float32)
    b = beta.reshape(Cout, 1).astype(jnp.float32)

    # Keep well under v7x's 64 MiB physical VMEM when auto-selecting the tile.
    vmem_budget = 52 * 1024 * 1024
    if tile_co is None:
        tile_co = _pick_cout_tile(Cout, Cin, NL, mm_itemsize, vmem_budget)
    assert Cout % tile_co == 0
    grid = (Cout // tile_co,)

    # Derived VMEM limit: actual buffers + 2 MiB headroom, clamped.
    vmem_limit = _vmem_estimate(Cin, NL, tile_co, mm_itemsize) + (2 << 20)
    vmem_limit = max(vmem_limit, 16 * 1024 * 1024)
    vmem_limit = min(vmem_limit, 100 * 1024 * 1024)

    kernel = functools.partial(
        _fused_kernel,
        inv_count=float(1.0 / NL),
        eps=float(eps),
    )

    flops = 2 * NL * Cin * Cout + 10 * NL * Cout
    bytes_accessed = (mm_itemsize * (Cin * NL + Cout * Cin)
                      + 4 * (2 * Cout * NL + 2 * Cout))

    out = pl.pallas_call(
        kernel,
        out_shape=jax.ShapeDtypeStruct((Cout, NL), jnp.float32),
        grid_spec=pltpu.PrefetchScalarGridSpec(
            num_scalar_prefetch=0,
            grid=grid,
            in_specs=[
                pl.BlockSpec((Cin, NL), lambda i: (0, 0)),        # x (invariant)
                pl.BlockSpec((tile_co, Cin), lambda i: (i, 0)),   # weight slab
                pl.BlockSpec((tile_co, NL), lambda i: (i, 0)),    # residual slab
                pl.BlockSpec((tile_co, 1), lambda i: (i, 0)),     # gamma
                pl.BlockSpec((tile_co, 1), lambda i: (i, 0)),     # beta
            ],
            out_specs=pl.BlockSpec((tile_co, NL), lambda i: (i, 0)),
        ),
        compiler_params=pltpu.CompilerParams(
            dimension_semantics=("parallel",),
            vmem_limit_bytes=int(vmem_limit),
        ),
        cost_estimate=pl.CostEstimate(
            flops=int(flops), transcendentals=int(Cout),
            bytes_accessed=int(bytes_accessed)),
    )(x, w_mat, res, g, b)

    # (Cout, N*L) -> NCHW
    return jnp.transpose(out.reshape(Cout, N, L), (1, 0, 2)).reshape(N, Cout, H, W)


def reference(x33, x21, conv_w, gamma, beta, eps=1e-5):
    """Pure-JAX reference matching the PyTorch training-mode forward."""
    w = conv_w.reshape(conv_w.shape[0], conv_w.shape[1])
    y = jnp.einsum("nchw,oc->nohw", x33, w)
    mean = jnp.mean(y, axis=(0, 2, 3), keepdims=True)
    var = jnp.mean((y - mean) ** 2, axis=(0, 2, 3), keepdims=True)
    yn = (y - mean) * jax.lax.rsqrt(var + eps)
    yn = yn * gamma.reshape(1, -1, 1, 1) + beta.reshape(1, -1, 1, 1)
    return jnp.maximum(x21 + yn, 0.0)


if __name__ == "__main__":
    key = jax.random.PRNGKey(0)
    k1, k2, k3, k4, k5 = jax.random.split(key, 5)

    # Small shapes consistent with the module (original: N=1, C=528, H=W=56).
    N, C, H, W = 2, 32, 16, 16

    x33 = jax.random.normal(k1, (N, C, H, W), dtype=jnp.float32)
    x21 = jax.random.normal(k2, (N, C, H, W), dtype=jnp.float32)
    conv_w = 0.1 * jax.random.normal(k3, (C, C, 1, 1), dtype=jnp.float32)
    gamma = 1.0 + 0.1 * jax.random.normal(k4, (C,), dtype=jnp.float32)
    beta = 0.1 * jax.random.normal(k5, (C,), dtype=jnp.float32)

    ref = reference(x33, x21, conv_w, gamma, beta)

    # f32-operand path: tight check (auto tile_co -> 16, grid=(2,)).
    out_f32 = conv_bn_add_relu(x33, x21, conv_w, gamma, beta,
                               matmul_dtype=jnp.float32)
    out_f32 = jax.block_until_ready(out_f32)
    assert out_f32.shape == (N, C, H, W)
    assert jnp.allclose(out_f32, ref, atol=2e-4, rtol=2e-4), float(
        jnp.max(jnp.abs(out_f32 - ref)))

    # Default fast path: bf16 MXU operands, f32 stats; tile_co=8 exercises a
    # multi-step (grid=4) parallel grid.
    out_bf16 = conv_bn_add_relu(x33, x21, conv_w, gamma, beta, tile_co=8)
    out_bf16 = jax.block_until_ready(out_bf16)
    assert out_bf16.shape == (N, C, H, W)
    assert jnp.allclose(out_bf16, ref, atol=5e-2, rtol=5e-2), float(
        jnp.max(jnp.abs(out_bf16 - ref)))

    print("KERNEL_OK")
</pallas_src>

<mosaic_0001>
module attributes {stable_mosaic.version = 11 : i64} {
  func.func @_fused_kernel(%arg0: i32, %arg1: memref<32x512xf32, #tpu.memory_space<vmem>>, %arg2: memref<16x32xf32, #tpu.memory_space<vmem>>, %arg3: memref<16x512xf32, #tpu.memory_space<vmem>>, %arg4: memref<16x1xf32, #tpu.memory_space<vmem>>, %arg5: memref<16x1xf32, #tpu.memory_space<vmem>>, %arg6: memref<16x512xf32, #tpu.memory_space<vmem>>) attributes {dimension_semantics = [#tpu.dimension_semantics<parallel>], iteration_bounds = array<i64: 2>, scalar_prefetch = 0 : i64, scratch_operands = 0 : i64, tpu.core_type = #tpu.core_type<tc>, window_params = [{pipeline_mode = #tpu.pipeline_mode<synchronous>, transform_indices = @transform_0, window_bounds = array<i64: 32, 512>}, {transform_indices = @transform_1, window_bounds = array<i64: 16, 32>}, {transform_indices = @transform_2, window_bounds = array<i64: 16, 512>}, {transform_indices = @transform_3, window_bounds = array<i64: 16, 1>}, {transform_indices = @transform_4, window_bounds = array<i64: 16, 1>}, {transform_indices = @transform_5, window_bounds = array<i64: 16, 512>}]} {
    %c0 = arith.constant 0 : index
    %c0_0 = arith.constant 0 : index
    %0 = vector.load %arg2[%c0, %c0_0] : memref<16x32xf32, #tpu.memory_space<vmem>>, vector<16x32xf32>
    %c0_1 = arith.constant 0 : index
    %c0_2 = arith.constant 0 : index
    %1 = vector.load %arg1[%c0_1, %c0_2] : memref<32x512xf32, #tpu.memory_space<vmem>>, vector<32x512xf32>
    %cst = arith.constant dense<0.000000e+00> : vector<16x512xf32>
    %2 = tpu.matmul %0, %1, %cst {dimension_numbers = #tpu.dot_dimension_numbers<[1], [0], [0], [1], [0, 0, 1, 1], [], []>} : vector<16x32xf32>, vector<32x512xf32>, vector<16x512xf32> -> vector<16x512xf32>
    %cst_3 = arith.constant dense<0.000000e+00> : vector<16xf32>
    %3 = vector.multi_reduction <add>, %2, %cst_3 [1] : vector<16x512xf32> to vector<16xf32>
    %4 = vector.shape_cast %3 : vector<16xf32> to vector<16x1xf32>
    %5 = arith.mulf %2, %2 : vector<16x512xf32>
    %cst_4 = arith.constant dense<0.000000e+00> : vector<16xf32>
    %6 = vector.multi_reduction <add>, %5, %cst_4 [1] : vector<16x512xf32> to vector<16xf32>
    %7 = vector.shape_cast %6 : vector<16xf32> to vector<16x1xf32>
    %cst_5 = arith.constant 0.001953125 : f32
    %8 = vector.broadcast %cst_5 : f32 to vector<16x1xf32>
    %9 = arith.mulf %4, %8 : vector<16x1xf32>
    %cst_6 = arith.constant 0.001953125 : f32
    %10 = vector.broadcast %cst_6 : f32 to vector<16x1xf32>
    %11 = arith.mulf %7, %10 : vector<16x1xf32>
    %12 = arith.mulf %9, %9 : vector<16x1xf32>
    %13 = arith.subf %11, %12 : vector<16x1xf32>
    %cst_7 = arith.constant 0.000000e+00 : f32
    %14 = vector.broadcast %cst_7 : f32 to vector<16x1xf32>
    %15 = arith.maximumf %13, %14 : vector<16x1xf32>
    %cst_8 = arith.constant 9.99999974E-6 : f32
    %16 = vector.broadcast %cst_8 : f32 to vector<16x1xf32>
    %17 = arith.addf %15, %16 : vector<16x1xf32>
    %18 = math.rsqrt %17 : vector<16x1xf32>
    %c0_9 = arith.constant 0 : index
    %c0_10 = arith.constant 0 : index
    %19 = vector.load %arg4[%c0_9, %c0_10] : memref<16x1xf32, #tpu.memory_space<vmem>>, vector<16x1xf32>
    %20 = arith.mulf %19, %18 : vector<16x1xf32>
    %c0_11 = arith.constant 0 : index
    %c0_12 = arith.constant 0 : index
    %21 = vector.load %arg5[%c0_11, %c0_12] : memref<16x1xf32, #tpu.memory_space<vmem>>, vector<16x1xf32>
    %22 = arith.mulf %9, %20 : vector<16x1xf32>
    %23 = arith.subf %21, %22 : vector<16x1xf32>
    %24 = vector.broadcast %20 : vector<16x1xf32> to vector<16x512xf32>
    %25 = arith.mulf %2, %24 : vector<16x512xf32>
    %26 = vector.broadcast %23 : vector<16x1xf32> to vector<16x512xf32>
    %27 = arith.addf %25, %26 : vector<16x512xf32>
    %c0_13 = arith.constant 0 : index
    %c0_14 = arith.constant 0 : index
    %28 = vector.load %arg3[%c0_13, %c0_14] : memref<16x512xf32, #tpu.memory_space<vmem>>, vector<16x512xf32>
    %29 = arith.addf %27, %28 : vector<16x512xf32>
    %cst_15 = arith.constant 0.000000e+00 : f32
    %30 = vector.broadcast %cst_15 : f32 to vector<16x512xf32>
    %31 = arith.maximumf %29, %30 : vector<16x512xf32>
    %c0_16 = arith.constant 0 : index
    %c0_17 = arith.constant 0 : index
    %32 = vector.load %arg6[%c0_16, %c0_17] : memref<16x512xf32, #tpu.memory_space<vmem>>, vector<16x512xf32>
    tpu.vector_store %arg6[%c0_16, %c0_17], %31 {strides = array<i32>} : memref<16x512xf32, #tpu.memory_space<vmem>>, vector<16x512xf32>,
    return
  }
  func.func @transform_0(%arg0: i32) -> (i32, i32) {
    %c0_i32 = arith.constant 0 : i32
    %c0_i32_0 = arith.constant 0 : i32
    %c0_i32_1 = arith.constant 0 : i32
    return %c0_i32, %c0_i32_0 : i32, i32
  }
  func.func @transform_1(%arg0: i32) -> (i32, i32) {
    %c0_i32 = arith.constant 0 : i32
    %c0_i32_0 = arith.constant 0 : i32
    return %arg0, %c0_i32 : i32, i32
  }
  func.func @transform_2(%arg0: i32) -> (i32, i32) {
    %c0_i32 = arith.constant 0 : i32
    %c0_i32_0 = arith.constant 0 : i32
    return %arg0, %c0_i32 : i32, i32
  }
  func.func @transform_3(%arg0: i32) -> (i32, i32) {
    %c0_i32 = arith.constant 0 : i32
    %c0_i32_0 = arith.constant 0 : i32
    return %arg0, %c0_i32 : i32, i32
  }
  func.func @transform_4(%arg0: i32) -> (i32, i32) {
    %c0_i32 = arith.constant 0 : i32
    %c0_i32_0 = arith.constant 0 : i32
    return %arg0, %c0_i32 : i32, i32
  }
  func.func @transform_5(%arg0: i32) -> (i32, i32) {
    %c0_i32 = arith.constant 0 : i32
    %c0_i32_0 = arith.constant 0 : i32
    return %arg0, %c0_i32 : i32, i32
  }
}

</mosaic_0001>

<bundles_post_ra>
// kernel: tpu_custom_call.1
= control target key start
LH: loop header
LB: loop body
LE: loop exit
PB: predicated region body
PF: predicated region fallthrough
CT: control target
= control target key end

     0   :  { %10 = vsyncpa [#allocation3], 0  ;;  %s1332_s0 = inlined_call_operand.hbm [shape: f32[32,512], index: 0, kind: input, shape index: {}]   ;;  %s1333_s1 = inlined_call_operand.vmem [shape: f32[32,32], index: 1, kind: input, shape index: {}]   ;;  %s1334_s2 = inlined_call_operand.hbm [shape: f32[32,512], index: 2, kind: input, shape index: {}]   ;;  %s1335_s3 = inlined_call_operand.vmem [shape: f32[32,1], index: 3, kind: input, shape index: {}]   ;;  %s1336_s4 = inlined_call_operand.vmem [shape: f32[32,1], index: 4, kind: input, shape index: {}]   ;;  %s1337_s5 = inlined_call_operand.hbm [shape: f32[32,512], index: 5, kind: output, shape index: {}]  }
   0x1   :  { %11 = vsyncpa [#allocation6], 0 }
   0x2   :  { %13 = vsyncpa [#allocation6 + $0x1], 0 }
   0x3   :  { %14 = vsyncpa [#allocation4], 0 }
   0x4   :  { %16 = vsyncpa [#allocation4 + $0x1], 0  ;;  %s1048_s18 = smov 0   ;;  %s1050_s19 = smov 0  }
   0x5   :  { %s1052_s20 = smov 0   ;;  %s1054_s21 = smov 0  }
   0x6 LB: > { %s1069_s22 = sadd.s32 4294967295, %s1007_s21   ;;  %s762_s23 = sadd.s32 4294967294, %s1007_s21   ;;  %s1007_s21 = sphi %s1054_s21, %s1357_s21   ;;  %s1003_s20 = sphi %s1052_s20, %s1356_s20   ;;  %s999_s19 = sphi %s1050_s19, %s1355_s19   ;;  %s995_s18 = sphi %s1048_s18, %s1354_s18  }
   0x7   : > { %p89_p0 = scmp.ne.s32.totalorder %s999_s19, %s995_s18  ;;  %p1338_p1 = scmp.eq.s32.totalorder %s1069_s22, 0 }
   0x8   : > { %p171_p3 = scmp.eq.s32.totalorder %s762_s23, 1  ;;  %p763_p5 = scmp.ge.s32.totalorder %s1007_s21, 1 }
   0x9   : > { %p1078_p4 = por %p1338_p1, %p89_p0  ;;  %p178_p7 = scmp.lt.s32.totalorder %s1007_s21, 3 }
   0xa   : > { %p1083_p6 = por %p171_p3, %p89_p0  ;;  %s1009_s27 = smov [#allocation2]  }
   0xb   : > { %s1341_s24 = scalar_select %p1078_p4, 1, 0 }
   0xc   : > { %s1342_s25 = scalar_select %p1083_p6, 1, 0 }
   0xd   : > { %p1088_p8 = pnand %p763_p5, %p178_p7  ;;  %s190_s28 = sshll.u32 %s1009_s27, 4  ;;  %s1092_s28 = int_to_ptr.vmem [resolvable:$true] %s190_s28 }
   0xe   : > { %s1104_s30 = sadd.s32 1, %s1007_s21   ;;  %s76_s6 = sadd.s32 1, %s1003_s20 }
   0xf   : > { %s1343_s26 = scalar_select %p1088_p8, 1, 0 }
  0x10   : > { %p818_p9 = pneg %p1088_p8  ;;  %s73_s7 = ssub.s32 %s1007_s21, %s1104_s30 }
  0x11   : > { %s879_s10 = scalar_lea.hbm %s1332_s0, 2048 }
  0x12   : > { %p1099_p11 = pnand %p818_p9, %p1338_p1  ;;  %p880_p12 = scmp.ne.s32.totalorder %s1332_s0, %s879_s10 }
  0x13   : > { %p886_p5 = scmp.lt.u32.totalorder %s879_s10, %s1332_s0 }
  0x14   : > { %p881_p13 = pneg %p1099_p11 }
  0x16   : > { %p882_p0 = pnand %p881_p13, %p880_p12 }
  0x18   : > { %p883_p3 = pneg %p882_p0 }
  0x1a   : > { %p888_p7 = pnand %p886_p5, %p883_p3 }
  0x1c   : > { %891 = shalt.err (!%p888_p7)
}
  0x1d   : > { %s892_s15 = scalar_lea.vmem %s1092_s28, 2048  ;;  %p900_p2 = scmp.lt.s32.totalorder %s1092_s28, %s1092_s28 }
  0x1e   : > { %p893_p9 = scmp.ne.s32.totalorder %s1092_s28, %s892_s15  ;;  %p901_p6 = scmp.lt.s32.totalorder %s892_s15, %s892_s15 }
  0x20   : > { %p895_p10 = pnand %p893_p9, %p881_p13  ;;  %p902_p4 = por %p901_p6, %p900_p2 }
  0x22   : > { %p896_p1 = pneg %p895_p10 }
  0x24   : > { %p903_p8 = pnand %p902_p4, %p896_p1 }
  0x26   : > { %906 = shalt.err (!%p903_p8)
}
  0x27   : > { %s1010_s16 = smov 512   ;;  %s1011_s17 = smov 32  }
  0x28   : > { %821 = dma.hbm_to_vmem [thread:$0]  (!%p1099_p11), %s1332_s0, 2048, %s1092_s28, [#allocation3], %s1010_s16, %s1010_s16, %s1011_s17  }
  0x29   : > { %p74_p1 = scmp.eq.s32.totalorder %s73_s7, 0  ;;  %p83_p2 = scmp.ne.s32.totalorder %s1003_s20, %s999_s19 }
  0x2a   : > { %p84_p4 = scmp.eq.s32.totalorder %s1007_s21, 0  ;;  %p831_p6 = scmp.lt.s32.totalorder %s1007_s21, 2 }
  0x2b   : > { %s1138_s8 = scalar_select %p74_p1, %s1003_s20, %s76_s6  }
  0x2c   : > { %p85_p8 = por %p84_p4, %p83_p2  ;;  %p1345_p10 = scmp.eq.s32.totalorder %s1069_s22, 1 }
  0x2d   : > { %s213_s29 = sand.u32 1, %s1003_s20   ;;  %s791_s10 = sshll.u32 %s1007_s21, 10 }
  0x2e   : > { %p1142_p12 = por %p1345_p10, %p83_p2  ;;  %s766_s11 = sshll.u32 %s213_s29, 6 }
  0x2f   : > { %s1151_s14 = scalar_lea.hbm %s1334_s2, %s791_s10  ;;  %s217_s28 = scalar_lea.vmem [#allocation5], %s766_s11 }
  0x30   : > { %s225_s6 = sshll.u32 %s217_s28, 4  ;;  %p1153_p11 = pnand %p831_p6, %p85_p8  ;;  %s1157_s6 = int_to_ptr.vmem [resolvable:$true] %s225_s6 }
  0x31   : > { %s1159_s15 = scalar_lea.sflag [#allocation6], %s213_s29  ;;  %s907_s23 = scalar_lea.hbm %s1151_s14, 1024 }
  0x32   : > { %p908_p13 = scmp.ne.s32.totalorder %s1151_s14, %s907_s23  ;;  %p909_p0 = pneg %p1153_p11 }
  0x33   : > { %s912_s11 = scalar_lea.hbm %s1334_s2, 2048  ;;  %p913_p7 = scmp.lt.u32.totalorder %s1151_s14, %s1334_s2 }
  0x34   : > { %p910_p3 = pnand %p909_p0, %p908_p13  ;;  %p914_p9 = scmp.lt.u32.totalorder %s912_s11, %s907_s23 }
  0x35   : > { %p916_p2 = scmp.lt.u32.totalorder %s907_s23, %s1151_s14 }
  0x36   : > { %p911_p5 = pneg %p910_p3  ;;  %p915_p1 = por %p914_p9, %p913_p7 }
  0x38   : > { %p917_p4 = por %p916_p2, %p915_p1 }
  0x3a   : > { %p918_p6 = pnand %p917_p4, %p911_p5 }
  0x3c   : > { %921 = shalt.err (!%p918_p6)
}
  0x3d   : > { %s922_s29 = scalar_lea.vmem %s1157_s6, 1024  ;;  %s1012_s28 = smov [#allocation5]  }
  0x3e   : > { %p923_p8 = scmp.ne.s32.totalorder %s1157_s6, %s922_s29  ;;  %s927_s27 = sshll.u32 %s1012_s28, 4  ;;  %s928_s27 = int_to_ptr.vmem [resolvable:$false] %s927_s27 }
  0x3f   : > { %s929_s10 = scalar_lea.vmem %s928_s27, 2048  ;;  %p930_p3 = scmp.lt.s32.totalorder %s1157_s6, %s928_s27 }
  0x40   : > { %p925_p10 = pnand %p923_p8, %p909_p0  ;;  %p931_p7 = scmp.lt.s32.totalorder %s929_s10, %s922_s29 }
  0x42   : > { %p926_p13 = pneg %p925_p10  ;;  %p932_p9 = por %p931_p7, %p930_p3 }
  0x44   : > { %p933_p1 = pnand %p932_p9, %p926_p13 }
  0x46   : > { %936 = shalt.err (!%p933_p1)
}
  0x47   : > { %825 = dma.hbm_to_vmem [thread:$0]  (!%p1153_p11), %s1151_s14, 1024, %s1157_s6, %s1159_s15, %s1010_s16, %s1010_s16, %s1011_s17  }
  0x48   : > { %p1348_p0 = scmp.ne.s32.totalorder %s1343_s26, 0 }
  0x49   : > { %p1349_p5 = scmp.eq.s32.totalorder (!%p1348_p0), %s1069_s22, 0 }
  0x4a   : > { %255 = sbr.rel (%p1348_p0) target bundleno = 646 (0x286), region = 40 }
  0x51   : > { %982 = dma.done.wait (%p1349_p5), [#allocation3], 2048   ;;  %p1350_p2 = pmov %p1349_p5 }
  0x52   : > { %s1197_s23 = sand.u32 1, %s999_s19   ;;  %p1351_p11 = scmp.ne.s32.totalorder %s1341_s24, 0 }
  0x53   : > { %984 = vsyncadd (%p1350_p2), [#allocation3], 4294965248  ;;  %s772_s7 = sshll.u32 %s1197_s23, 6  ;;  %s262_s11 = scalar_lea.sflag [#allocation6], %s1197_s23 }
  0x54   : > { %s1203_s16 = scalar_lea.vmem [#allocation5], %s772_s7 }
  0x55   : > { %986 = dma.done.wait (%p1351_p11), %s262_s11, 1024  }
  0x56   : > { %988 = vsyncadd (%p1351_p11), %s262_s11, 4294966272  ;;  %s774_s26 = sshll.u32 %s1069_s22, 1  ;;  %v1013_v0 = vmov 0.0   ;;  %v330_v1 = vld [vmem:[#allocation2 + $0x8] sm:$0xff]  ;;  %v329_v3 = vld [vmem:[#allocation2] sm:$0xff]  ;;  %vm345_vm0 = vcmask 261120  }
  0x57   : > { %416 = vmatprep.mubr.f32.mxu0 %v1013_v0  ;;  %p308_p4 = scmp.lt.s32.totalorder %s774_s26, 3  ;;  %493 = vmatprep.mubr.f32.mxu1 %v1013_v0  ;;  %v334_v2 = vld [vmem:[#allocation2 + $0x28] sm:$0xff]  ;;  %v333_v5 = vld [vmem:[#allocation2 + $0x20] sm:$0xff]  ;;  %v332_v6 = vld [vmem:[#allocation2 + $0x18] sm:$0xff]  ;;  %v1014_v55 = vmov 0   ;;  %s793_s10 = sshll.u32 %s1069_s22, 10 }
  0x58   : > { %v794_v4 = vpack.c.bf16 %v334_v2, %v330_v1  ;;  %v336_v7 = vld [vmem:[#allocation2 + $0x38] sm:$0xff]  ;;  %v796_v8 = vpack.c.bf16 %v333_v5, %v329_v3  ;;  %v331_v10 = vld [vmem:[#allocation2 + $0x10] sm:$0xff]  ;;  %v338_v12 = vld [vmem:[#allocation2 + $0x48] sm:$0xff]  ;;  %873 = vset.pattern.permute.xlu0 %v1014_v55  ;;  %874 = vset.pattern.permute.xlu1 %v1014_v55  ;;  %s306_s11 = scalar_lea.vmem [#allocation7], %s772_s7  ;;  %s1286_s17 = scalar_lea.hbm %s1337_s5, %s793_s10 }
  0x59   : > { %s1359_s26 = smov (!%p308_p4, %s774_s26), 3  ;;  %v802_v9 = vpack.c.bf16 %v336_v7, %v332_v6  ;;  %v335_v11 = vld [vmem:[#allocation2 + $0x30] sm:$0xff]  ;;  %v342_v14 = vld [vmem:[#allocation2 + $0x68] sm:$0xff]  ;;  %v337_v15 = vld [vmem:[#allocation2 + $0x40] sm:$0xff]  ;;  %s627_s22 = scalar_lea.sflag [#allocation4], %s1197_s23 }
  0x5a   : > { %s1210_s24 = sshll.u32 %s1359_s26, 3  ;;  %795 = vmatprep.subr.bf16.mxu0 %v794_v4  ;;  %v804_v13 = vpack.c.bf16 %v335_v11, %v331_v10  ;;  %v341_v16 = vld [vmem:[#allocation2 + $0x60] sm:$0xff]  ;;  %v798_v17 = vpack.c.bf16 %v342_v14, %v338_v12  ;;  %v340_v19 = vld [vmem:[#allocation2 + $0x58] sm:$0xff]  ;;  %v339_v21 = vld [vmem:[#allocation2 + $0x50] sm:$0xff]  ;;  %s641_s26 = sshll.u32 %s306_s11, 4  ;;  %s1288_s26 = int_to_ptr.vmem [resolvable:$true] %s641_s26 }
  0x5b   : > { %797 = vmatpush1.bf16.msra.mxu0 %v796_v8  ;;  %803 = vmatprep.subr.bf16.mxu1 %v802_v9  ;;  %v800_v18 = vpack.c.bf16 %v341_v16, %v337_v15  ;;  %v344_v20 = vld [vmem:[#allocation2 + $0x78] sm:$0xff]  ;;  %v343_v23 = vld [vmem:[#allocation2 + $0x70] sm:$0xff]  ;;  %s311_s6 = scalar_lea.vmem %s1333_s1, %s1210_s24  ;;  %s318_s13 = scalar_lea.vmem %s1335_s3, %s1210_s24 }
  0x5c   : > { %805 = vmatpush1.bf16.msra.mxu1 %v804_v13  ;;  %v806_v22 = vpack.c.bf16 %v344_v20, %v340_v19  ;;  %799 = vmatprep.subr.bf16.mxu0 %v798_v17  ;;  %v808_v24 = vpack.c.bf16 %v343_v23, %v339_v21  ;;  %v327_v25 = vld [vmem:[%s311_s6] sm:$0xff]  ;;  %v328_v26 = vld [vmem:[%s311_s6 + $0x8] sm:$0xff]  ;;  %s324_s27 = scalar_lea.vmem %s1336_s4, %s1210_s24  ;;  %v601_v55 = vld [vmem:[%s1203_s16 + $0x38] sm:$0xff]  ;;  %s937_s7 = scalar_lea.vmem %s1288_s26, 1024 }
  0x5d   : > { %v548_v8 = vld [vmem:[%s318_s13] sm:$0xff]  ;;  %v549_v11 = vld [vmem:[%s318_s13 + $0x8] sm:$0xff]  ;;  %p938_p6 = scmp.ne.s32.totalorder %s1288_s26, %s937_s7  ;;  %s1015_s14 = smov [#allocation7]  }
  0x5e   : > { %807 = vmatprep.subr.bf16.mxu1 %v806_v22  ;;  %v552_v15 = vld [vmem:[%s324_s27] sm:$0xff]  ;;  %s941_s6 = sshll.u32 %s1015_s14, 4  ;;  %s942_s6 = int_to_ptr.vmem [resolvable:$false] %s941_s6 }
  0x5f   : > { %801 = vmatpush1.bf16.msra.mxu0 %v800_v18  ;;  %v553_v18 = vld [vmem:[%s324_s27 + $0x8] sm:$0xff]  ;;  %p939_p8 = pnand %p938_p6, %p1142_p12  ;;  %s943_s15 = scalar_lea.vmem %s942_s6, 2048 }
  0x60   : > { %809 = vmatpush1.bf16.msra.mxu1 %v808_v24  ;;  %p944_p13 = scmp.lt.s32.totalorder %s1288_s26, %s942_s6  ;;  %p945_p3 = scmp.lt.s32.totalorder %s943_s15, %s937_s7 }
  0x61   : > { %p940_p10 = pneg %p939_p8 }
  0x62   : > { %780 = vmatmul.mubr.msk.f32.vlgmr.msra.gmra.mrb[0].mxu0 %vm345_vm0, %v327_v25  ;;  %p946_p7 = por %p945_p3, %p944_p13 }
  0x63   : > { %782 = vmatmul.mubr.msk.f32.vlgmr.msra.gmra.mrb[0].mxu1 %vm345_vm0, %v327_v25  ;;  %422 = vmatprep.mubr.f32.mxu0 %v1013_v0 }
  0x64   : > { %499 = vmatprep.mubr.f32.mxu1 %v1013_v0  ;;  %p947_p9 = pnand %p946_p7, %p940_p10 }
  0x66   : > { %781 = vmatmul.mubr.msk.f32.gmra.mrb[2].mxu0 %vm345_vm0, %v328_v26 }
  0x67   : > { %783 = vmatmul.mubr.msk.f32.gmra.mrb[2].mxu1 %vm345_vm0, %v328_v26  ;;  %v594_v26 = vld [vmem:[%s1203_s16] sm:$0xff] }
 0x135   : > { %v1216_v27 = vpop.f32.mrb[0].mxu0 }
 0x136   : > { %v516_v28 = vmul.f32 %v1216_v27, %v1216_v27  ;;  %v1220_v29 = vpop.f32.mrb[1].mxu0  ;;  %v1222_v30 = vpop.f32.mrb[0].mxu1 }
 0x137   : > { %v506_v31 = vadd.f32 %v1220_v29, %v1216_v27  ;;  %v517_v32 = vmul.f32 %v1220_v29, %v1220_v29  ;;  %v1228_v33 = vpop.f32.mrb[1].mxu1  ;;  %v518_v34 = vmul.f32 %v1222_v30, %v1222_v30 }
 0x138   : > { %v519_v46 = vmul.f32 %v1228_v33, %v1228_v33 }
 0x139   : > { %v1232_v35 = vpop.f32.mrb[2].mxu0  ;;  %v507_v36 = vadd.f32 %v506_v31, %v1222_v30  ;;  %v524_v37 = vadd.f32 %v517_v32, %v516_v28  ;;  %v595_v28 = vld [vmem:[%s1203_s16 + $0x8] sm:$0xff]  ;;  %v596_v31 = vld [vmem:[%s1203_s16 + $0x10] sm:$0xff]  ;;  %v597_v32 = vld [vmem:[%s1203_s16 + $0x18] sm:$0xff] }
 0x13a   : > { %v520_v38 = vmul.f32 %v1232_v35, %v1232_v35  ;;  %v1237_v39 = vpop.f32.mrb[3].mxu0  ;;  %v1239_v40 = vpop.f32.mrb[2].mxu1 }
 0x13b   : > { %v511_v41 = vadd.f32 %v1237_v39, %v1232_v35  ;;  %v521_v42 = vmul.f32 %v1237_v39, %v1237_v39  ;;  %v522_v43 = vmul.f32 %v1239_v40, %v1239_v40  ;;  %v1247_v44 = vpop.f32.mrb[3].mxu1  ;;  %v508_v45 = vadd.f32 %v507_v36, %v1228_v33 }
 0x13c   : > { %v525_v47 = vadd.f32 %v524_v37, %v518_v34  ;;  %v523_v51 = vmul.f32 %v1247_v44, %v1247_v44 }
 0x13d   : > { %v529_v48 = vadd.f32 %v521_v42, %v520_v38  ;;  %509 = vadd.xlane.f32.xlu0 %v508_v45  ;;  %v512_v49 = vadd.f32 %v511_v41, %v1239_v40 }
 0x13e   : > { %v526_v50 = vadd.f32 %v525_v47, %v519_v46  ;;  %v598_v47 = vld [vmem:[%s1203_s16 + $0x20] sm:$0xff] }
 0x13f   : > { %v513_v52 = vadd.f32 %v512_v49, %v1247_v44  ;;  %v530_v53 = vadd.f32 %v529_v48, %v522_v43  ;;  %v599_v48 = vld [vmem:[%s1203_s16 + $0x28] sm:$0xff] }
 0x140   : > { %527 = vadd.xlane.f32.xlu1 %v526_v50 }
 0x141   : > { %514 = vadd.xlane.f32.xlu0 %v513_v52  ;;  %v531_v54 = vadd.f32 %v530_v53, %v523_v51 }
 0x144   : > { %532 = vadd.xlane.f32.xlu1 %v531_v54  ;;  %v600_v54 = vld [vmem:[%s1203_s16 + $0x30] sm:$0xff] }
 0x1ca   : > { %v510_v56 = vpop.xlane.xlu0 %509 }
 0x1cb   : > { %v534_v57 = vmul.f32 0.001953125, %v510_v56 }
 0x1cd   : > { %v538_v58 = vmul.f32 %v534_v57, %v534_v57  ;;  %v528_v59 = vpop.xlane.xlu1 %527 }
 0x1ce   : > { %v536_v60 = vmul.f32 0.001953125, %v528_v59  ;;  %v515_v61 = vpop.xlane.xlu0 %514 }
 0x1cf   : > { %v535_v62 = vmul.f32 0.001953125, %v515_v61 }
 0x1d0   : > { %v540_v63 = vsub.f32 %v536_v60, %v538_v58 }
 0x1d1   : > { %v539_v0 = vmul.f32 %v535_v62, %v535_v62  ;;  %v533_v1 = vpop.xlane.xlu1 %532 }
 0x1d2   : > { %v542_v2 = vmax.f32 %v540_v63, 0.0  ;;  %v537_v3 = vmul.f32 0.001953125, %v533_v1 }
 0x1d4   : > { %v544_v4 = vadd.f32 1e-05, %v542_v2  ;;  %v541_v5 = vsub.f32 %v537_v3, %v539_v0 }
 0x1d6   : > { %875 = vrsqrt.f32 %v544_v4  ;;  %v543_v6 = vmax.f32 %v541_v5, 0.0 }
 0x1d8   : > { %v545_v7 = vadd.f32 1e-05, %v543_v6 }
 0x1da   : > { %877 = vrsqrt.f32 %v545_v7 }
 0x1e0   : > { %v876_v9 = vpop.eup %875 }
 0x1e1   : > { %v550_v10 = vmul.f32 %v876_v9, %v548_v8 }
 0x1e3   : > { %560 = vperm.xlu0 %873, %v550_v10   ;;  %v554_v14 = vmul.f32 %v550_v10, %v534_v57 }
 0x1e4   : > { %v878_v12 = vpop.eup %877 }
 0x1e5   : > { %v551_v13 = vmul.f32 %v878_v12, %v549_v11  ;;  %v556_v16 = vsub.f32 %v552_v15, %v554_v14 }
 0x1e7   : > { %565 = vperm.xlu1 %874, %v551_v13   ;;  %v555_v17 = vmul.f32 %v551_v13, %v535_v62 }
 0x1e9   : > { %v557_v19 = vsub.f32 %v553_v18, %v555_v17 }
 0x1eb   : > { %578 = vperm.xlu1 %874, %v556_v16  }
 0x1ef   : > { %583 = vperm.xlu1 %874, %v557_v19  }
 0x262   : > { %v561_v20 = vpop.permute.xlu0 %560 }
 0x263   : > { %v568_v22 = vmul.f32 %v561_v20, %v1216_v27  ;;  %v569_v23 = vmul.f32 %v561_v20, %v1220_v29  ;;  %v570_v24 = vmul.f32 %v561_v20, %v1222_v30  ;;  %v571_v25 = vmul.f32 %v561_v20, %v1228_v33 }
 0x266   : > { %v566_v21 = vpop.permute.xlu1 %565 }
 0x267   : > { %v572_v30 = vmul.f32 %v566_v21, %v1232_v35  ;;  %v573_v33 = vmul.f32 %v566_v21, %v1237_v39  ;;  %v574_v45 = vmul.f32 %v566_v21, %v1239_v40  ;;  %v575_v46 = vmul.f32 %v566_v21, %v1247_v44 }
 0x26a   : > { %v579_v34 = vpop.permute.xlu1 %578 }
 0x26b   : > { %v586_v36 = vadd.f32 %v579_v34, %v568_v22  ;;  %v587_v37 = vadd.f32 %v579_v34, %v569_v23  ;;  %v588_v38 = vadd.f32 %v579_v34, %v570_v24  ;;  %v589_v41 = vadd.f32 %v579_v34, %v571_v25 }
 0x26d   : > { %v602_v42 = vadd.f32 %v594_v26, %v586_v36  ;;  %v603_v27 = vadd.f32 %v595_v28, %v587_v37  ;;  %v604_v29 = vadd.f32 %v596_v31, %v588_v38  ;;  %v605_v43 = vadd.f32 %v597_v32, %v589_v41 }
 0x26e   : > { %v584_v49 = vpop.permute.xlu1 %583 }
 0x26f   : > { %v610_v50 = vmax.f32 %v602_v42, 0.0  ;;  %v611_v51 = vmax.f32 %v603_v27, 0.0  ;;  %v612_v52 = vmax.f32 %v604_v29, 0.0  ;;  %v613_v53 = vmax.f32 %v605_v43, 0.0 }
 0x270   : > { %v590_v56 = vadd.f32 %v584_v49, %v572_v30  ;;  %v591_v57 = vadd.f32 %v584_v49, %v573_v33  ;;  %v592_v35 = vadd.f32 %v584_v49, %v574_v45  ;;  %v593_v58 = vadd.f32 %v584_v49, %v575_v46 }
 0x271   : > { %618 = vst [vmem:[%s306_s11] sm:$0xff] %v610_v50  ;;  %619 = vst [vmem:[%s306_s11 + $0x8] sm:$0xff] %v611_v51 }
 0x272   : > { %620 = vst [vmem:[%s306_s11 + $0x10] sm:$0xff] %v612_v52  ;;  %621 = vst [vmem:[%s306_s11 + $0x18] sm:$0xff] %v613_v53  ;;  %v606_v39 = vadd.f32 %v598_v47, %v590_v56  ;;  %v607_v40 = vadd.f32 %v599_v48, %v591_v57  ;;  %v608_v44 = vadd.f32 %v600_v54, %v592_v35 }
 0x273   : > { %v609_v59 = vadd.f32 %v601_v55, %v593_v58 }
 0x274   : > { %v614_v60 = vmax.f32 %v606_v39, 0.0  ;;  %v615_v61 = vmax.f32 %v607_v40, 0.0  ;;  %v616_v62 = vmax.f32 %v608_v44, 0.0 }
 0x275   : > { %v617_v63 = vmax.f32 %v609_v59, 0.0 }
 0x276   : > { %622 = vst [vmem:[%s306_s11 + $0x20] sm:$0xff] %v614_v60  ;;  %623 = vst [vmem:[%s306_s11 + $0x28] sm:$0xff] %v615_v61 }
 0x277   : > { %624 = vst [vmem:[%s306_s11 + $0x30] sm:$0xff] %v616_v62  ;;  %625 = vst [vmem:[%s306_s11 + $0x38] sm:$0xff] %v617_v63 }
 0x278   : > { %950 = shalt.err (!%p947_p9)
}
 0x279   : > { %s951_s12 = scalar_lea.hbm %s1286_s17, 1024  ;;  %s955_s28 = scalar_lea.hbm %s1337_s5, 2048 }
 0x27a   : > { %p952_p1 = scmp.ne.s32.totalorder %s1286_s17, %s951_s12  ;;  %p956_p2 = scmp.lt.u32.totalorder %s1286_s17, %s1337_s5 }
 0x27b   : > { %p957_p11 = scmp.lt.u32.totalorder %s955_s28, %s951_s12  ;;  %p959_p6 = scmp.lt.u32.totalorder %s951_s12, %s1286_s17 }
 0x27c   : > { %p953_p0 = pnand %p952_p1, %p1142_p12 }
 0x27d   : > { %p958_p4 = por %p957_p11, %p956_p2 }
 0x27e   : > { %p954_p5 = pneg %p953_p0 }
 0x27f   : > { %p960_p8 = por %p959_p6, %p958_p4 }
 0x281   : > { %p961_p10 = pnand %p960_p8, %p954_p5 }
 0x283   : > { %964 = shalt.err (!%p961_p10)
}
 0x284   : > { %s1016_s11 = smov 512   ;;  %s1017_s24 = smov 32  }
 0x285   : > { %816 = dma.vmem_to_hbm [thread:$0]  (%p1142_p12), %s1288_s26, 1024, %s1286_s17, %s627_s22, %s1016_s11, %s1016_s11, %s1017_s24  }
 0x286 PF: > { %s656_s16 = sand.u32 1, %s995_s18   ;;  %p1352_p13 = scmp.ne.s32.totalorder %s1342_s25, 0 }
 0x287   : > { %p1353_p3 = scmp.ge.s32.totalorder %s1007_s21, 2  ;;  %s657_s7 = scalar_lea.sflag [#allocation4], %s656_s16 }
 0x289   : > { %p827_p7 = pnand %p1353_p3, %p1352_p13 }
 0x28b   : > { %990 = dma.done.wait (!%p827_p7), %s657_s7, 1024  }
 0x28c   : > { %992 = vsyncadd (!%p827_p7), %s657_s7, 4294966272  ;;  %p19_p9 = scmp.ge.s32.totalorder %s1104_s30, 4   ;;  %s1354_s18 = smov %s999_s19 }
 0x28d   : > { %s1355_s19 = smov %s1003_s20  ;;  %s1356_s20 = smov %s1138_s8 }
 0x28e   : > { %s1357_s21 = smov %s1104_s30  ;;  %21 = sbr.rel (!%p19_p9) target bundleno = 6 (0x6), region = 99 }
 0x295   :  { %662 = vsyncpa [#allocation3], 1 }
 0x296   :  { %664 = vsyncpa [#allocation3 + $0x1], 1 }
 0x297   :  { %665 = vsyncpa [#allocation6], 1 }
 0x298   :  { %667 = vsyncpa [#allocation6 + $0x1], 1 }
 0x299   :  { %668 = vsyncpa [#allocation4], 1 }
 0x29a   :  { %670 = vsyncpa [#allocation4 + $0x1], 1 }

</bundles_post_ra>
